<compile_context>
chip_gen: v7x
topology: tpu7x:2x2x1
jax: 0.10.0
libtpu: 0.0.40
codegen_flags: <defaults>
</compile_context>

<pallas_src>
import math

import jax
import jax.numpy as jnp
from jax.experimental import pallas as pl
from jax.experimental.pallas import tpu as pltpu


def _round_up(x, m):
    return (x + m - 1) // m * m


def time_embedding_kernel(arg_ref, w1_ref, b1_ref, w2_ref, b2_ref, out_ref):
    # arg_ref: (TB, K)         f32 phase-shifted sinusoid argument  t*[f,f] + [0, pi/2]
    # w1_ref:  (K, N_pad)      bf16 Linear(n/4 -> n) weights, pre-transposed, zero-padded
    # b1_ref:  (1, N_pad)      f32
    # w2_ref:  (N_pad, N_pad)  bf16 Linear(n -> n) weights, pre-transposed, zero-padded
    # b2_ref:  (1, N_pad)      f32
    # out_ref: (TB, N_pad)
    emb = jnp.sin(arg_ref[...])                                   # == [sin(tf) | cos(tf)] (EUP, f32)
    # Linear 1 + Swish.  bf16 operands (3x fewer MXU passes), f32 accumulation.
    h = jnp.dot(emb.astype(jnp.bfloat16), w1_ref[...],
                preferred_element_type=jnp.float32) + b1_ref[...]
    h = h * jax.nn.sigmoid(h)                                     # Swish in f32 (VPU/EUP)
    # Linear 2.
    out = jnp.dot(h.astype(jnp.bfloat16), w2_ref[...],
                  preferred_element_type=jnp.float32) + b2_ref[...]
    out_ref[...] = out.astype(out_ref.dtype)


def init_time_embedding_params(w1, b1, w2, b2, n_channels):
    """One-time (model-init) preprocessing of TimeEmbedding parameters.

    Weights arrive in torch nn.Linear layout:
      w1: (n_channels, n_channels // 4),  b1: (n_channels,)
      w2: (n_channels, n_channels),       b2: (n_channels,)
    Returns a dict of kernel-ready arrays (pre-transposed, lane-padded, bf16 weights,
    f32 biases) plus the frequency / phase tables, so the per-call wrapper does no
    weight reads or rewrites.
    """
    embed_dim = n_channels // 8
    K = n_channels // 4          # = 2 * embed_dim
    N = n_channels
    N_pad = _round_up(max(N, 128), 128)

    # Sinusoidal frequency table (exactly as in the module) + phase trick.
    scale = math.log(10000.0) / max(embed_dim - 1, 1)
    freqs = jnp.exp(jnp.arange(embed_dim, dtype=jnp.float32) * -scale)
    freqs2 = jnp.concatenate([freqs, freqs])                                    # (K,)
    phase = jnp.concatenate([jnp.zeros((embed_dim,), jnp.float32),
                             jnp.full((embed_dim,), jnp.pi / 2, jnp.float32)])  # (K,)

    # Pre-transpose to (in, out) so the kernel computes x @ W + b; pad only the
    # output dim to a lane multiple (K stays unpadded: full-dim blocks are legal).
    w1_t = jnp.pad(w1.T.astype(jnp.float32),
                   ((0, 0), (0, N_pad - N))).astype(jnp.bfloat16)               # (K, N_pad)
    w2_t = jnp.pad(w2.T.astype(jnp.float32),
                   ((0, N_pad - N), (0, N_pad - N))).astype(jnp.bfloat16)       # (N_pad, N_pad)
    b1_p = jnp.pad(b1.astype(jnp.float32), (0, N_pad - N)).reshape(1, N_pad)
    b2_p = jnp.pad(b2.astype(jnp.float32), (0, N_pad - N)).reshape(1, N_pad)

    return dict(freqs2=freqs2, phase=phase, w1_t=w1_t, b1_p=b1_p,
                w2_t=w2_t, b2_p=b2_p, K=K, N=N, N_pad=N_pad)


def time_embedding(t, params, *, tb=None):
    """DDPM TimeEmbedding forward.  t: (B,) -> (B, n_channels), f32.

    tb = batch tile (multiple of 8).  Default: one grid step for B <= 256 (halves
    fixed per-step cost, single straight-line body); tb=256 for training-size
    batches on v6e/v7x (128 suffices on v5e).
    """
    B = t.shape[0]
    K, N, N_pad = params["K"], params["N"], params["N_pad"]

    if tb is None:
        tb = _round_up(B, 8) if B <= 256 else 256
    B_pad = _round_up(max(B, tb), tb)
    steps = B_pad // tb

    # Sinusoid argument, computed in the wrapper (tiny: B*K f32); removes the
    # in-kernel (B,1)x(1,K) broadcast and padded DMAs of t / freqs / phase.
    arg = (t.astype(jnp.float32)[:, None] * params["freqs2"][None, :]
           + params["phase"][None, :])                                          # (B, K)
    arg = jnp.pad(arg, ((0, B_pad - B), (0, 0)))

    # Megacore sharding only pays off when there are enough grid steps to amortize
    # each TensorCore DMA-ing its own weight copy.
    semantics = ("parallel",) if steps >= 8 else ("arbitrary",)

    out = pl.pallas_call(
        time_embedding_kernel,
        out_shape=jax.ShapeDtypeStruct((B_pad, N_pad), jnp.float32),
        grid_spec=pltpu.PrefetchScalarGridSpec(
            num_scalar_prefetch=0,
            grid=(steps,),
            in_specs=[
                pl.BlockSpec((tb, K), lambda i: (i, 0)),         # activation tile streams
                pl.BlockSpec((K, N_pad), lambda i: (0, 0)),      # weights stay resident
                pl.BlockSpec((1, N_pad), lambda i: (0, 0)),
                pl.BlockSpec((N_pad, N_pad), lambda i: (0, 0)),
                pl.BlockSpec((1, N_pad), lambda i: (0, 0)),
            ],
            out_specs=pl.BlockSpec((tb, N_pad), lambda i: (i, 0)),
        ),
        compiler_params=pltpu.CompilerParams(dimension_semantics=semantics),
    )(arg, params["w1_t"], params["b1_p"], params["w2_t"], params["b2_p"])

    return out[:B, :N]


def reference(t, w1, b1, w2, b2, n_channels):
    """Pure-JAX (f32) replica of the PyTorch TimeEmbedding.forward."""
    embed_dim = n_channels // 8
    scale = math.log(10000.0) / max(embed_dim - 1, 1)
    freqs = jnp.exp(jnp.arange(embed_dim, dtype=jnp.float32) * -scale)
    emb = t.astype(jnp.float32)[:, None] * freqs[None, :]
    emb = jnp.concatenate([jnp.sin(emb), jnp.cos(emb)], axis=1)
    h = emb @ w1.T + b1
    h = h * jax.nn.sigmoid(h)
    return h @ w2.T + b2


if __name__ == "__main__":
    base_channels = 64
    n_channels = base_channels * 4   # UNet builds TimeEmbedding(n_channels * 4) = 256
    batch = 16

    key = jax.random.PRNGKey(0)
    k_t, k_w1, k_b1, k_w2, k_b2 = jax.random.split(key, 5)

    # Example "timestep" input (float, like t.float() in DDPM usage).
    t = jax.random.uniform(k_t, (batch,), jnp.float32, minval=0.0, maxval=1000.0)

    # Deterministic parameters in torch nn.Linear layout (out_features, in_features).
    in1, out1 = n_channels // 4, n_channels
    w1 = jax.random.normal(k_w1, (out1, in1), jnp.float32) * 0.02
    b1 = jax.random.normal(k_b1, (out1,), jnp.float32) * 0.02
    w2 = jax.random.normal(k_w2, (n_channels, n_channels), jnp.float32) * 0.02
    b2 = jax.random.normal(k_b2, (n_channels,), jnp.float32) * 0.02

    # One-time weight preprocessing (model init), then per-call forward.
    params = init_time_embedding_params(w1, b1, w2, b2, n_channels)
    params = jax.tree_util.tree_map(
        lambda x: jax.block_until_ready(x) if isinstance(x, jax.Array) else x, params)

    out = time_embedding(t, params)            # single grid step for this batch
    out = jax.block_until_ready(out)

    ref = reference(t, w1, b1, w2, b2, n_channels)
    assert out.shape == (batch, n_channels)
    max_err = float(jnp.max(jnp.abs(out - ref)))
    # Tolerance reflects bf16 MXU operands (~2^-9 relative per cast) vs the f32 reference.
    assert jnp.allclose(out, ref, atol=5e-3, rtol=5e-3), \
        f"mismatch vs reference (max abs err {max_err})"

    print("KERNEL_OK")
</pallas_src>

<mosaic_0001>
module attributes {stable_mosaic.version = 11 : i64} {
  func.func @time_embedding_kernel(%arg0: i32, %arg1: memref<16x64xf32, #tpu.memory_space<vmem>>, %arg2: memref<64x256xbf16, #tpu.memory_space<vmem>>, %arg3: memref<1x256xf32, #tpu.memory_space<vmem>>, %arg4: memref<256x256xbf16, #tpu.memory_space<vmem>>, %arg5: memref<1x256xf32, #tpu.memory_space<vmem>>, %arg6: memref<16x256xf32, #tpu.memory_space<vmem>>) attributes {dimension_semantics = [#tpu.dimension_semantics<arbitrary>], iteration_bounds = array<i64: 1>, scalar_prefetch = 0 : i64, scratch_operands = 0 : i64, tpu.core_type = #tpu.core_type<tc>, window_params = [{transform_indices = @transform_0, window_bounds = array<i64: 16, 64>}, {pipeline_mode = #tpu.pipeline_mode<synchronous>, transform_indices = @transform_1, window_bounds = array<i64: 64, 256>}, {pipeline_mode = #tpu.pipeline_mode<synchronous>, transform_indices = @transform_2, window_bounds = array<i64: 1, 256>}, {pipeline_mode = #tpu.pipeline_mode<synchronous>, transform_indices = @transform_3, window_bounds = array<i64: 256, 256>}, {pipeline_mode = #tpu.pipeline_mode<synchronous>, transform_indices = @transform_4, window_bounds = array<i64: 1, 256>}, {transform_indices = @transform_5, window_bounds = array<i64: 16, 256>}]} {
    %c0 = arith.constant 0 : index
    %c0_0 = arith.constant 0 : index
    %0 = vector.load %arg1[%c0, %c0_0] : memref<16x64xf32, #tpu.memory_space<vmem>>, vector<16x64xf32>
    %1 = math.sin %0 : vector<16x64xf32>
    %2 = arith.truncf %1 : vector<16x64xf32> to vector<16x64xbf16>
    %c0_1 = arith.constant 0 : index
    %c0_2 = arith.constant 0 : index
    %3 = vector.load %arg2[%c0_1, %c0_2] : memref<64x256xbf16, #tpu.memory_space<vmem>>, vector<64x256xbf16>
    %cst = arith.constant dense<0.000000e+00> : vector<16x256xf32>
    %4 = tpu.matmul %2, %3, %cst {dimension_numbers = #tpu.dot_dimension_numbers<[1], [0], [0], [1], [0, 0, 1, 1], [], []>} : vector<16x64xbf16>, vector<64x256xbf16>, vector<16x256xf32> -> vector<16x256xf32>
    %c0_3 = arith.constant 0 : index
    %c0_4 = arith.constant 0 : index
    %5 = vector.load %arg3[%c0_3, %c0_4] : memref<1x256xf32, #tpu.memory_space<vmem>>, vector<1x256xf32>
    %6 = vector.broadcast %5 : vector<1x256xf32> to vector<16x256xf32>
    %7 = arith.addf %4, %6 : vector<16x256xf32>
    %8 = arith.negf %7 : vector<16x256xf32>
    %9 = math.exp %8 : vector<16x256xf32>
    %cst_5 = arith.constant 1.000000e+00 : f32
    %10 = vector.broadcast %cst_5 : f32 to vector<16x256xf32>
    %11 = arith.addf %10, %9 : vector<16x256xf32>
    %12 = arith.divf %10, %11 : vector<16x256xf32>
    %13 = arith.mulf %7, %12 : vector<16x256xf32>
    %14 = arith.truncf %13 : vector<16x256xf32> to vector<16x256xbf16>
    %c0_6 = arith.constant 0 : index
    %c0_7 = arith.constant 0 : index
    %15 = vector.load %arg4[%c0_6, %c0_7] : memref<256x256xbf16, #tpu.memory_space<vmem>>, vector<256x256xbf16>
    %cst_8 = arith.constant dense<0.000000e+00> : vector<16x256xf32>
    %16 = tpu.matmul %14, %15, %cst_8 {dimension_numbers = #tpu.dot_dimension_numbers<[1], [0], [0], [1], [0, 0, 1, 1], [], []>} : vector<16x256xbf16>, vector<256x256xbf16>, vector<16x256xf32> -> vector<16x256xf32>
    %c0_9 = arith.constant 0 : index
    %c0_10 = arith.constant 0 : index
    %17 = vector.load %arg5[%c0_9, %c0_10] : memref<1x256xf32, #tpu.memory_space<vmem>>, vector<1x256xf32>
    %18 = vector.broadcast %17 : vector<1x256xf32> to vector<16x256xf32>
    %19 = arith.addf %16, %18 : vector<16x256xf32>
    %c0_11 = arith.constant 0 : index
    %c0_12 = arith.constant 0 : index
    %20 = vector.load %arg6[%c0_11, %c0_12] : memref<16x256xf32, #tpu.memory_space<vmem>>, vector<16x256xf32>
    tpu.vector_store %arg6[%c0_11, %c0_12], %19 {strides = array<i32>} : memref<16x256xf32, #tpu.memory_space<vmem>>, vector<16x256xf32>,
    return
  }
  func.func @transform_0(%arg0: i32) -> (i32, i32) {
    %c0_i32 = arith.constant 0 : i32
    %c0_i32_0 = arith.constant 0 : i32
    return %arg0, %c0_i32 : i32, i32
  }
  func.func @transform_1(%arg0: i32) -> (i32, i32) {
    %c0_i32 = arith.constant 0 : i32
    %c0_i32_0 = arith.constant 0 : i32
    %c0_i32_1 = arith.constant 0 : i32
    return %c0_i32, %c0_i32_0 : i32, i32
  }
  func.func @transform_2(%arg0: i32) -> (i32, i32) {
    %c0_i32 = arith.constant 0 : i32
    %c0_i32_0 = arith.constant 0 : i32
    %c0_i32_1 = arith.constant 0 : i32
    return %c0_i32, %c0_i32_0 : i32, i32
  }
  func.func @transform_3(%arg0: i32) -> (i32, i32) {
    %c0_i32 = arith.constant 0 : i32
    %c0_i32_0 = arith.constant 0 : i32
    %c0_i32_1 = arith.constant 0 : i32
    return %c0_i32, %c0_i32_0 : i32, i32
  }
  func.func @transform_4(%arg0: i32) -> (i32, i32) {
    %c0_i32 = arith.constant 0 : i32
    %c0_i32_0 = arith.constant 0 : i32
    %c0_i32_1 = arith.constant 0 : i32
    return %c0_i32, %c0_i32_0 : i32, i32
  }
  func.func @transform_5(%arg0: i32) -> (i32, i32) {
    %c0_i32 = arith.constant 0 : i32
    %c0_i32_0 = arith.constant 0 : i32
    return %arg0, %c0_i32 : i32, i32
  }
}

</mosaic_0001>

<bundles_post_ra>
// kernel: tpu_custom_call.1
= control target key start
LH: loop header
LB: loop body
LE: loop exit
PB: predicated region body
PF: predicated region fallthrough
CT: control target
= control target key end

     0   :  { %10 = vsyncpa [#allocation3], 0  ;;  %s1168_s0 = inlined_call_operand.hbm [shape: f32[16,64], index: 0, kind: input, shape index: {}]   ;;  %s1169_s1 = inlined_call_operand.hbm [shape: bf16[64,256], index: 1, kind: input, shape index: {}]   ;;  %s1170_s2 = inlined_call_operand.vmem [shape: f32[1,256], index: 2, kind: input, shape index: {}]   ;;  %s1171_s3 = inlined_call_operand.hbm [shape: bf16[256,256], index: 3, kind: input, shape index: {}]   ;;  %s1172_s4 = inlined_call_operand.vmem [shape: f32[1,256], index: 4, kind: input, shape index: {}]   ;;  %s1173_s5 = inlined_call_operand.hbm [shape: f32[16,256], index: 5, kind: output, shape index: {}]  }
   0x1   :  { %11 = vsyncpa [#allocation6], 0 }
   0x2   :  { %12 = vsyncpa [#allocation4], 0  ;;  %s934_s18 = smov [#allocation5]   ;;  %s935_s20 = smov [#allocation2]  }
   0x3   :  { %s30_s19 = sshll.u32 %s934_s18, 4  ;;  %s18_s21 = sshll.u32 %s935_s20, 4  ;;  %s31_s19 = int_to_ptr.vmem [resolvable:$true] %s30_s19  ;;  %s979_s21 = int_to_ptr.vmem [resolvable:$true] %s18_s21 }
   0x4   :  { %s840_s24 = scalar_lea.hbm %s1169_s1, 1024 }
   0x5   :  { %p841_p0 = scmp.ne.s32.totalorder %s1169_s1, %s840_s24  ;;  %p844_p1 = scmp.lt.u32.totalorder %s840_s24, %s1169_s1 }
   0x7   :  { %p846_p2 = pnand %p844_p1, %p841_p0 }
   0x9   :  { %849 = shalt.err (!%p846_p2)
}
   0xa   :  { %s850_s29 = scalar_lea.vmem %s31_s19, 1024  ;;  %p855_p4 = scmp.lt.s32.totalorder %s31_s19, %s31_s19 }
   0xb   :  { %p851_p3 = scmp.ne.s32.totalorder %s31_s19, %s850_s29  ;;  %p856_p5 = scmp.lt.s32.totalorder %s850_s29, %s850_s29 }
   0xd   :  { %p857_p6 = por %p856_p5, %p855_p4 }
   0xf   :  { %p858_p7 = pnand %p857_p6, %p851_p3 }
  0x11   :  { %861 = shalt.err (!%p858_p7)
}
  0x12   :  { %s936_s30 = smov 128   ;;  %s937_s6 = smov 8  }
  0x13   :  { %36 = dma.hbm_to_vmem [thread:$0]  %s1169_s1, 1024, %s31_s19, [#allocation6], %s936_s30, %s936_s30, %s937_s6  }
  0x14   :  { %s862_s11 = scalar_lea.hbm %s1168_s0, 256 }
  0x15   :  { %p863_p8 = scmp.ne.s32.totalorder %s1168_s0, %s862_s11  ;;  %p866_p9 = scmp.lt.u32.totalorder %s862_s11, %s1168_s0 }
  0x17   :  { %p868_p10 = pnand %p866_p9, %p863_p8 }
  0x19   :  { %871 = shalt.err (!%p868_p10)
}
  0x1a   :  { %s872_s16 = scalar_lea.vmem %s979_s21, 256  ;;  %p877_p12 = scmp.lt.s32.totalorder %s979_s21, %s979_s21 }
  0x1b   :  { %p873_p11 = scmp.ne.s32.totalorder %s979_s21, %s872_s16  ;;  %p878_p13 = scmp.lt.s32.totalorder %s872_s16, %s872_s16 }
  0x1d   :  { %p879_p0 = por %p878_p13, %p877_p12 }
  0x1f   :  { %p880_p1 = pnand %p879_p0, %p873_p11 }
  0x21   :  { %883 = shalt.err (!%p880_p1)
}
  0x22   :  { %24 = dma.hbm_to_vmem [thread:$0]  %s1168_s0, 256, %s979_s21, [#allocation3], %s936_s30, %s936_s30, %s937_s6  }
  0x23   :  { %s938_s18 = smov [#allocation7]   ;;  %s884_s23 = scalar_lea.hbm %s1171_s3, 4096 }
  0x24   :  { %s44_s19 = sshll.u32 %s938_s18, 4  ;;  %p885_p2 = scmp.ne.s32.totalorder %s1171_s3, %s884_s23  ;;  %s45_s19 = int_to_ptr.vmem [resolvable:$true] %s44_s19 }
  0x25   :  { %p888_p3 = scmp.lt.u32.totalorder %s884_s23, %s1171_s3 }
  0x27   :  { %p890_p4 = pnand %p888_p3, %p885_p2 }
  0x29   :  { %893 = shalt.err (!%p890_p4)
}
  0x2a   :  { %s894_s28 = scalar_lea.vmem %s45_s19, 4096  ;;  %p899_p6 = scmp.lt.s32.totalorder %s45_s19, %s45_s19 }
  0x2b   :  { %p895_p5 = scmp.ne.s32.totalorder %s45_s19, %s894_s28  ;;  %p900_p7 = scmp.lt.s32.totalorder %s894_s28, %s894_s28 }
  0x2d   :  { %p901_p8 = por %p900_p7, %p899_p6 }
  0x2f   :  { %p902_p9 = pnand %p901_p8, %p895_p5 }
  0x31   :  { %905 = shalt.err (!%p902_p9)
}
  0x32   :  { %50 = dma.hbm_to_vmem [thread:$0]  %s1171_s3, 4096, %s45_s19, [#allocation6], %s936_s30, %s936_s30, %s937_s6  }
  0x33   :  { %928 = dma.done.wait [#allocation3], 256  }
  0x34   :  { %929 = vsyncadd [#allocation3], 4294967040 }
  0x35   :  { %930 = dma.done.wait [#allocation6], 5120  }
  0x36   :  { %931 = vsyncadd [#allocation6], 4294962176  ;;  %v939_v0 = vmov 0   ;;  %v756_v1 = vld [vmem:[#allocation5 + $0x4] ss:$8 sps:$4 sm:$0xff]   ;;  %v1031_v7 = vld [vmem:[#allocation2] sm:$0xff] }
  0x37   :  { %370 = vmatprep.mubr.bf16.mxu0 %v939_v0  ;;  %v758_v2 = vld [vmem:[#allocation5] ss:$8 sps:$4 sm:$0xff]   ;;  %338 = vmatprep.subr.bf16.mxu0 %v756_v1  ;;  %v759_v3 = vld [vmem:[#allocation5 + $0x14] ss:$8 sps:$4 sm:$0xff]   ;;  %v761_v4 = vld [vmem:[#allocation5 + $0x10] ss:$8 sps:$4 sm:$0xff]  }
  0x38   :  { %339 = vmatpush1.bf16.msra.mxu0 %v758_v2  ;;  %v762_v5 = vld [vmem:[#allocation5 + $0x24] ss:$8 sps:$4 sm:$0xff]   ;;  %v764_v6 = vld [vmem:[#allocation5 + $0x20] ss:$8 sps:$4 sm:$0xff]   ;;  %v1033_v8 = vld [vmem:[#allocation2 + $0x8] sm:$0xff]  ;;  %v68_v10 = vand.u32 2139095040, %v1031_v7 }
  0x39   :  { %340 = vmatprep.subr.bf16.mxu0 %v759_v3  ;;  %v65_v9 = vand.u32 2147483647, %v1031_v7  ;;  %v169_v11 = vand.u32 2147483647, %v1033_v8  ;;  %v172_v12 = vand.u32 2139095040, %v1033_v8  ;;  %vm67_vm14 = vcmp.lt.s32.totalorder %v1031_v7, 0 }
  0x3a   :  { %v768_v13 = vld [vmem:[#allocation7 + $0x4] ss:$8 sps:$4 sm:$0xff]   ;;  %v765_v14 = vld [vmem:[#allocation5 + $0x34] ss:$8 sps:$4 sm:$0xff]   ;;  %v69_v15 = vshrl.u32 %v68_v10, 23  ;;  %s946_s6 = smov [#allocation8]  }
  0x3b   :  { %v72_v16 = vand.u32 8388607, %v65_v9  ;;  %v173_v17 = vshrl.u32 %v172_v12, 23  ;;  %v176_v18 = vand.u32 8388607, %v169_v11  ;;  %615 = vmatprep.subr.bf16.mxu1 %v768_v13  ;;  %s667_s7 = sshll.u32 %s946_s6, 4  ;;  %s668_s7 = int_to_ptr.vmem [resolvable:$true] %s667_s7 }
  0x3c   :  { %341 = vmatpush1.bf16.msra.mxu0 %v761_v4  ;;  %v680_v19 = vadd.s32 4294967169, %v69_v15  ;;  %v770_v20 = vld [vmem:[#allocation7] ss:$8 sps:$4 sm:$0xff]   ;;  %v771_v21 = vld [vmem:[#allocation7 + $0x14] ss:$8 sps:$4 sm:$0xff]   ;;  %s906_s8 = scalar_lea.vmem %s668_s7, 512  ;;  %p911_p11 = scmp.lt.s32.totalorder %s668_s7, %s668_s7 }
  0x3d   :  { %342 = vmatprep.subr.bf16.mxu0 %v762_v5  ;;  %v767_v22 = vld [vmem:[#allocation5 + $0x30] ss:$8 sps:$4 sm:$0xff]   ;;  %v684_v23 = vadd.s32 4294967169, %v173_v17  ;;  %v73_v24 = vor.u32 8388608, %v72_v16  ;;  %616 = vmatpush1.bf16.msra.mxu1 %v770_v20  ;;  %v177_v27 = vor.u32 8388608, %v176_v18  ;;  %p907_p10 = scmp.ne.s32.totalorder %s668_s7, %s906_s8  ;;  %p912_p12 = scmp.lt.s32.totalorder %s906_s8, %s906_s8 }
  0x3e   :  { %v75_v25 = vadd.s32 1, %v680_v19  ;;  %v773_v26 = vld [vmem:[#allocation7 + $0x10] ss:$8 sps:$4 sm:$0xff]   ;;  %617 = vmatprep.subr.bf16.mxu1 %v771_v21  ;;  %v774_v29 = vld [vmem:[#allocation7 + $0x24] ss:$8 sps:$4 sm:$0xff]  }
  0x3f   :  { %v179_v28 = vadd.s32 1, %v684_v23  ;;  %v776_v31 = vld [vmem:[#allocation7 + $0x20] ss:$8 sps:$4 sm:$0xff]   ;;  %v1045_v35 = vshll.u32 %v73_v24, 8  ;;  %v1049_v37 = vshll.u32 %v177_v27, 8  ;;  %p913_p13 = por %p912_p12, %p911_p11 }
  0x40   :  { %343 = vmatpush1.bf16.msra.mxu0 %v764_v6  ;;  %vm76_vm0 = vcmp.gt.s32.totalorder %v75_v25, 0  ;;  %v777_v38 = vld [vmem:[#allocation7 + $0x34] ss:$8 sps:$4 sm:$0xff]   ;;  %v940_v40 = vmov 683565275  }
  0x41   :  { %344 = vmatprep.subr.bf16.mxu0 %v765_v14  ;;  %v77_v30 = vsel %vm76_vm0, %v75_v25, 0  ;;  %vm180_vm1 = vcmp.gt.s32.totalorder %v179_v28, 0  ;;  %618 = vmatpush1.bf16.msra.mxu1 %v773_v26  ;;  %v941_v42 = vmov 2475754826   ;;  %v942_v44 = vmov 2131351028   ;;  %p914_p0 = pnand %p913_p13, %p907_p10 }
  0x42   :  { %v1043_v32 = vshrl.u32 %v77_v30, 5  ;;  %v79_v33 = vand.u32 31, %v77_v30  ;;  %v181_v34 = vsel %vm180_vm1, %v179_v28, 0  ;;  %619 = vmatprep.subr.bf16.mxu1 %v774_v29  ;;  %v779_v46 = vld [vmem:[#allocation7 + $0x30] ss:$8 sps:$4 sm:$0xff]   ;;  %vm171_vm0 = vcmp.lt.s32.totalorder %v1033_v8, 0 }
  0x43   :  { %v1047_v36 = vand.u32 31, %v181_v34  ;;  %v943_v47 = vmov 2102212464   ;;  %v944_v49 = vmov 920167782   ;;  %v1052_v51 = vshrl.u32 %v181_v34, 5 }
  0x44   :  { %345 = vmatpush1.bf16.msra.mxu0 %v767_v22  ;;  %v80_v39 = vsub.s32 32, %v79_v33  ;;  %v82_v41 = vshll.u32 %v940_v40, %v79_v33  ;;  %v85_v43 = vshll.u32 %v941_v42, %v79_v33  ;;  %v88_v45 = vshll.u32 %v942_v44, %v79_v33  ;;  %v780_v52 = vld [vmem:[#allocation7 + $0x44] ss:$8 sps:$4 sm:$0xff]   ;;  %v782_v0 = vld [vmem:[#allocation7 + $0x40] ss:$8 sps:$4 sm:$0xff]  }
  0x45   :  { %v91_v48 = vshll.u32 %v943_v47, %v79_v33  ;;  %v94_v50 = vshll.u32 %v944_v49, %v79_v33  ;;  %vm97_vm2 = vcmp.lt.s32.totalorder %v1043_v32, 1  ;;  %620 = vmatpush1.bf16.msra.mxu1 %v776_v31  ;;  %v945_v58 = vmov 1326507024   ;;  %v783_v4 = vld [vmem:[#allocation7 + $0x54] ss:$8 sps:$4 sm:$0xff]  }
  0x46   :  { %v81_v53 = vshrl.u32 %v940_v40, %v80_v39  ;;  %v83_v54 = vshrl.u32 %v941_v42, %v80_v39  ;;  %v86_v55 = vshrl.u32 %v942_v44, %v80_v39  ;;  %v89_v56 = vshrl.u32 %v943_v47, %v80_v39  ;;  %621 = vmatprep.subr.bf16.mxu1 %v777_v38  ;;  %v785_v29 = vld [vmem:[#allocation7 + $0x50] ss:$8 sps:$4 sm:$0xff]  }
  0x47   :  { %v92_v57 = vshrl.u32 %v944_v49, %v80_v39  ;;  %v95_v59 = vshrl.u32 %v945_v58, %v80_v39  ;;  %vm98_vm3 = vcmp.lt.s32.totalorder %v1043_v32, 2  ;;  %vm100_vm4 = vcmp.lt.s32.totalorder %v1043_v32, 4 }
  0x48   :  { %v84_v60 = vor.u32 %v83_v54, %v82_v41  ;;  %v87_v61 = vor.u32 %v86_v55, %v85_v43  ;;  %v90_v62 = vor.u32 %v89_v56, %v88_v45  ;;  %v184_v63 = vsub.s32 32, %v1047_v36 }
  0x49   :  { %v93_v1 = vor.u32 %v92_v57, %v91_v48  ;;  %v96_v2 = vor.u32 %v95_v59, %v94_v50  ;;  %vm99_vm5 = vcmp.lt.s32.totalorder %v1043_v32, 3  ;;  %v186_v3 = vshll.u32 %v940_v40, %v1047_v36  ;;  %622 = vmatpush1.bf16.msra.mxu1 %v779_v46  ;;  %v786_v32 = vld [vmem:[#allocation7 + $0x64] ss:$8 sps:$4 sm:$0xff]   ;;  %v788_v46 = vld [vmem:[#allocation7 + $0x60] ss:$8 sps:$4 sm:$0xff]  }
  0x4a   :  { %v101_v5 = vsel %vm97_vm2, %v81_v53, %v84_v60  ;;  %v102_v6 = vsel %vm100_vm4, %v90_v62, 2102212464  ;;  %v105_v10 = vsel %vm97_vm2, %v84_v60, %v87_v61  ;;  %v109_v12 = vsel %vm97_vm2, %v87_v61, %v90_v62  ;;  %623 = vmatprep.subr.bf16.mxu1 %v780_v52 }
  0x4b   :  { %v103_v13 = vsel %vm99_vm5, %v87_v61, %v102_v6  ;;  %v106_v14 = vsel %vm100_vm4, %v93_v1, 920167782  ;;  %v110_v15 = vsel %vm100_vm4, %v96_v2, 1326507024  ;;  %v189_v16 = vshll.u32 %v941_v42, %v1047_v36 }
  0x4c   :  { %v107_v17 = vsel %vm99_vm5, %v90_v62, %v106_v14  ;;  %v111_v18 = vsel %vm99_vm5, %v93_v1, %v110_v15  ;;  %v185_v19 = vshrl.u32 %v940_v40, %v184_v63  ;;  %v187_v20 = vshrl.u32 %v941_v42, %v184_v63 }
  0x4d   :  { %v104_v21 = vsel %vm98_vm3, %v101_v5, %v103_v13  ;;  %v108_v22 = vsel %vm98_vm3, %v105_v10, %v107_v17  ;;  %v112_v23 = vsel %vm98_vm3, %v109_v12, %v111_v18  ;;  %v190_v24 = vshrl.u32 %v942_v44, %v184_v63  ;;  %624 = vmatpush1.bf16.msra.mxu1 %v782_v0 }
  0x4e   :  { %v1079_v25 = vmul.u32.u64.low %v1045_v35, %v112_v23  ;;  %v1080_v26 = vmul.u32.u64.high %v1045_v35, %v112_v23, %v1079_v25  ;;  %v1083_v27 = vmul.u32.u64.low %v1045_v35, %v108_v22  ;;  %v1084_v28 = vmul.u32.u64.high %v1045_v35, %v108_v22, %v1083_v27  ;;  %625 = vmatprep.subr.bf16.mxu1 %v783_v4 }
  0x4f   :  { %v188_v30 = vor.u32 %v187_v20, %v186_v3  ;;  %v191_v31 = vor.u32 %v190_v24, %v189_v16  ;;  %v192_v33 = vshll.u32 %v942_v44, %v1047_v36  ;;  %v193_v34 = vshrl.u32 %v943_v47, %v184_v63 }
  0x50   :  { %v195_v38 = vshll.u32 %v943_v47, %v1047_v36  ;;  %v196_v39 = vshrl.u32 %v944_v49, %v184_v63  ;;  %v198_v40 = vshll.u32 %v944_v49, %v1047_v36  ;;  %v199_v41 = vshrl.u32 %v945_v58, %v184_v63 }
  0x51   :  { %v120_v42 = vmul.u32 %v1045_v35, %v104_v21  ;;  %v194_v43 = vor.u32 %v193_v34, %v192_v33  ;;  %vm201_vm6 = vcmp.lt.s32.totalorder %v1052_v51, 1  ;;  %vm202_vm7 = vcmp.lt.s32.totalorder %v1052_v51, 2  ;;  %626 = vmatpush1.bf16.msra.mxu1 %v785_v29 }
  0x52   :  { %vm122_vm8 = vc.u32 %v1080_v26, %v1083_v27  ;;  %v123_v44 = vadd.s32 1, %v1084_v28  ;;  %v197_v45 = vor.u32 %v196_v39, %v195_v38  ;;  %vm203_vm9 = vcmp.lt.s32.totalorder %v1052_v51, 3  ;;  %627 = vmatprep.subr.bf16.mxu1 %v786_v32 }
  0x53   :  { %v200_v47 = vor.u32 %v199_v41, %v198_v40  ;;  %vm204_vm10 = vcmp.lt.s32.totalorder %v1052_v51, 4  ;;  %v205_v35 = vsel %vm201_vm6, %v185_v19, %v188_v30  ;;  %v209_v36 = vsel %vm201_vm6, %v188_v30, %v191_v31 }
  0x54   :  { %v124_v48 = vsel %vm122_vm8, %v123_v44, %v1084_v28  ;;  %v206_v49 = vsel %vm204_vm10, %v194_v43, 2102212464  ;;  %v210_v50 = vsel %vm204_vm10, %v197_v45, 920167782  ;;  %v213_v52 = vsel %vm201_vm6, %v191_v31, %v194_v43 }
  0x55   :  { %v125_v53 = vadd.s32 %v124_v48, %v120_v42  ;;  %v207_v54 = vsel %vm203_vm9, %v191_v31, %v206_v49  ;;  %v211_v55 = vsel %vm203_vm9, %v194_v43, %v210_v50  ;;  %v214_v56 = vsel %vm204_vm10, %v200_v47, 1326507024  ;;  %628 = vmatpush1.bf16.msra.mxu1 %v788_v46 }
  0x56   :  { %v208_v57 = vsel %vm202_vm7, %v205_v35, %v207_v54  ;;  %v212_v58 = vsel %vm202_vm7, %v209_v36, %v211_v55  ;;  %v215_v59 = vsel %vm203_vm9, %v197_v45, %v214_v56  ;;  %vm1135_vm15 = vcmp.le.f32.partialorder %v65_v9, 0.7853982 }
  0x57   :  { %v126_v60 = vadd.s32 536870912, %v125_v53  ;;  %v216_v61 = vsel %vm202_vm7, %v213_v52, %v215_v59  ;;  %v1118_v62 = vmul.u32.u64.low %v1049_v37, %v212_v58  ;;  %v1119_v63 = vmul.u32.u64.high %v1049_v37, %v212_v58, %v1118_v62 }
  0x58   :  { %v1122_v0 = vmul.u32.u64.low %v1049_v37, %v216_v61  ;;  %v1123_v1 = vmul.u32.u64.high %v1049_v37, %v216_v61, %v1122_v0  ;;  %v224_v3 = vmul.u32 %v1049_v37, %v208_v57  ;;  %v121_v37 = vadd.s32 %v1083_v27, %v1080_v26 }
  0x59   :  { %v127_v2 = vshrl.u32 %v126_v60, 30  ;;  %v227_v5 = vadd.s32 1, %v1119_v63  ;;  %vm170_vm1 = vcmp.le.f32.partialorder %v169_v11, 0.7853982  ;;  %vm157_vm6 = vweird.f32 %v1031_v7 }
  0x5a   :  { %vm226_vm11 = vc.u32 %v1123_v1, %v1118_v62  ;;  %v225_v39 = vadd.s32 %v1118_v62, %v1123_v1  ;;  %vm261_vm9 = vweird.f32 %v1033_v8  ;;  %vm334_vm10 = vcmask 523264  }
  0x5b   :  { %v128_v4 = vshll.u32 %v127_v2, 30  ;;  %v228_v51 = vsel %vm226_vm11, %v227_v5, %v1119_v63  ;;  %v151_v35 = vsub.s32 4, %v127_v2 }
  0x5c   :  { %v229_v10 = vadd.s32 %v228_v51, %v224_v3 }
  0x5d   :  { %v129_v6 = vsub.s32 %v125_v53, %v128_v4  ;;  %v152_v54 = vsel %vm67_vm14, %v151_v35, %v127_v2 }
  0x5e   :  { %v230_v13 = vadd.s32 536870912, %v229_v10  ;;  %v154_v9 = vsel %vm1135_vm15, 0, %v152_v54 }
  0x5f   :  { %v131_v12 = vsub.s32 0, %v129_v6  ;;  %v158_v60 = vadd.s32 3, %v154_v9 }
  0x60   :  { %v231_v15 = vshrl.u32 %v230_v13, 30 }
  0x61   :  { %v681_v14 = vmin.u32 %v131_v12, %v129_v6  ;;  %v159_v1 = vand.u32 3, %v158_v60 }
  0x62   :  { %v232_v17 = vshll.u32 %v231_v15, 30  ;;  %v255_v56 = vsub.s32 4, %v231_v15 }
  0x63   :  { %v133_v16 = vclz %v681_v14  ;;  %vm161_vm2 = vcmp.eq.s32.totalorder %v159_v1, 0  ;;  %vm164_vm3 = vcmp.eq.s32.totalorder %v159_v1, 2  ;;  %vm160_vm4 = vcmp.lt.s32.totalorder %v159_v1, 2 }
  0x64   :  { %v233_v19 = vsub.s32 %v229_v10, %v232_v17  ;;  %v256_v59 = vsel %vm171_vm0, %v255_v56, %v231_v15 }
  0x65   :  { %v682_v18 = vadd.s32 4294967294, %v133_v16  ;;  %v258_v63 = vsel %vm170_vm1, 0, %v256_v59 }
  0x66   :  { %v235_v21 = vsub.s32 0, %v233_v19  ;;  %v262_v3 = vadd.s32 3, %v258_v63 }
  0x67   :  { %vm683_vm12 = vcmp.lt.s32.totalorder %v682_v18, 0 }
  0x68   :  { %v136_v20 = vsel %vm683_vm12, 0, %v682_v18  ;;  %v685_v25 = vmin.u32 %v235_v21, %v233_v19  ;;  %v789_v21 = vld [vmem:[#allocation7 + $0x74] ss:$8 sps:$4 sm:$0xff]  }
  0x69   :  { %v137_v22 = vsub.s32 32, %v136_v20  ;;  %v138_v23 = vshll.u32 %v129_v6, %v136_v20  ;;  %v141_v24 = vsub.s32 4294967266, %v136_v20  ;;  %v263_v6 = vand.u32 3, %v262_v3  ;;  %629 = vmatprep.subr.bf16.mxu1 %v789_v21 }
  0x6a   :  { %v237_v30 = vclz %v685_v25  ;;  %v797_v25 = vld [vmem:[#allocation7 + $0x90] ss:$8 sps:$4 sm:$0xff]  }
  0x6b   :  { %v139_v28 = vshrl.u32 %v121_v37, %v137_v22  ;;  %v142_v29 = vadd.s32 127, %v141_v24  ;;  %vm268_vm5 = vcmp.eq.s32.totalorder %v263_v6, 2  ;;  %vm265_vm7 = vcmp.eq.s32.totalorder %v263_v6, 0  ;;  %v791_v22 = vld [vmem:[#allocation7 + $0x70] ss:$8 sps:$4 sm:$0xff]  }
  0x6c   :  { %v686_v34 = vadd.s32 4294967294, %v237_v30  ;;  %vm264_vm8 = vcmp.lt.s32.totalorder %v263_v6, 2  ;;  %630 = vmatpush1.bf16.msra.mxu1 %v791_v22  ;;  %v795_v24 = vld [vmem:[#allocation7 + $0x94] ss:$8 sps:$4 sm:$0xff]   ;;  %v803_v30 = vld [vmem:[#allocation7 + $0xb0] ss:$8 sps:$4 sm:$0xff]  }
  0x6d   :  { %v140_v31 = vor.u32 %v139_v28, %v138_v23  ;;  %v143_v33 = vshll.u32 %v142_v29, 23  ;;  %v794_v23 = vld [vmem:[#allocation7 + $0x80] ss:$8 sps:$4 sm:$0xff]   ;;  %v801_v29 = vld [vmem:[#allocation7 + $0xb4] ss:$8 sps:$4 sm:$0xff]  }
  0x6e   :  { %vm687_vm13 = vcmp.lt.s32.totalorder %v686_v34, 0  ;;  %v800_v28 = vld [vmem:[#allocation7 + $0xa0] ss:$8 sps:$4 sm:$0xff]  }
  0x6f   :  { %v144_v32 = vor.u32 4788187, %v143_v33  ;;  %v147_v38 = vcvt.s32.f32 %v140_v31  ;;  %v240_v26 = vsel %vm687_vm13, 0, %v686_v34  ;;  %v804_v31 = vld [vmem:[#allocation7 + $0xc4] ss:$8 sps:$4 sm:$0xff]  }
  0x70   :  { %v241_v27 = vsub.s32 32, %v240_v26  ;;  %v242_v41 = vshll.u32 %v233_v19, %v240_v26  ;;  %v245_v42 = vsub.s32 4294967266, %v240_v26  ;;  %v806_v33 = vld [vmem:[#allocation7 + $0xc0] ss:$8 sps:$4 sm:$0xff]   ;;  %v807_v34 = vld [vmem:[#allocation7 + $0xd4] ss:$8 sps:$4 sm:$0xff]  }
  0x71   :  { %v145_v40 = vand.u32 2147483647, %v144_v32  ;;  %v809_v32 = vld [vmem:[#allocation7 + $0xd0] ss:$8 sps:$4 sm:$0xff]  }
  0x72   :  { %v243_v44 = vshrl.u32 %v225_v39, %v241_v27  ;;  %v246_v45 = vadd.s32 127, %v245_v42  ;;  %v812_v39 = vld [vmem:[#allocation7 + $0xe0] ss:$8 sps:$4 sm:$0xff]   ;;  %v815_v26 = vld [vmem:[#allocation7 + $0xf0] ss:$8 sps:$4 sm:$0xff]   ;;  %v284_v27 = vlaneseq }
  0x73   :  { %v148_v43 = vmul.f32 %v147_v38, %v145_v40  ;;  %v810_v38 = vld [vmem:[#allocation7 + $0xe4] ss:$8 sps:$4 sm:$0xff]   ;;  %v813_v40 = vld [vmem:[#allocation7 + $0xf4] ss:$8 sps:$4 sm:$0xff]  }
  0x74   :  { %v244_v36 = vor.u32 %v243_v44, %v242_v41  ;;  %v247_v48 = vshll.u32 %v246_v45, 23  ;;  %v285_v41 = vshrl.u32 %v284_v27, 7 }
  0x75   :  { %v149_v47 = vxor.u32 2147483648, %v148_v43 }
  0x76   :  { %v248_v52 = vor.u32 4788187, %v247_v48  ;;  %v251_v53 = vcvt.s32.f32 %v244_v36  ;;  %v286_v42 = vsub.s32 0, %v285_v41  ;;  %v290_v44 = vsub.s32 1, %v285_v41 }
  0x77   :  { %v150_v49 = vsel %vm67_vm14, %v149_v47, %v148_v43  ;;  %v282_v43 = vld [vmem:[%s1170_s2] sm:$0x3] }
  0x78   :  { %v153_v50 = vsel %vm1135_vm15, %v1031_v7, %v150_v49  ;;  %v249_v55 = vand.u32 2147483647, %v248_v52  ;;  %v792_v7 = vld [vmem:[#allocation7 + $0x84] ss:$8 sps:$4 sm:$0xff]   ;;  %v287_v45 = vrot.slane %v282_v43, %v286_v42  ;;  %v291_v46 = vrot.slane %v282_v43, %v290_v44 }
  0x79   :  { %816 = vcosq.f32 %v153_v50  ;;  %631 = vmatprep.subr.bf16.mxu1 %v792_v7 }
  0x7a   :  { %818 = vsinq.f32 %v153_v50  ;;  %v252_v57 = vmul.f32 %v251_v53, %v249_v55  ;;  %632 = vmatpush1.bf16.msra.mxu1 %v794_v23 }
  0x7b   :  { %633 = vmatprep.subr.bf16.mxu1 %v795_v24 }
  0x7c   :  { %v253_v58 = vxor.u32 2147483648, %v252_v57 }
  0x7e   :  { %v254_v61 = vsel %vm171_vm0, %v253_v58, %v252_v57  ;;  %634 = vmatpush1.bf16.msra.mxu1 %v797_v25 }
  0x7f   :  { %v257_v62 = vsel %vm170_vm1, %v1033_v8, %v254_v61  ;;  %v798_v8 = vld [vmem:[#allocation7 + $0xa4] ss:$8 sps:$4 sm:$0xff]  }
  0x80   :  { %820 = vcosq.f32 %v257_v62  ;;  %635 = vmatprep.subr.bf16.mxu1 %v798_v8 }
  0x81   :  { %822 = vsinq.f32 %v257_v62 }
  0x82   :  { %636 = vmatpush1.bf16.msra.mxu1 %v800_v28 }
  0x83   :  { %v817_v0 = vpop.eup %816  ;;  %637 = vmatprep.subr.bf16.mxu1 %v801_v29 }
  0x84   :  { %v819_v2 = vpop.eup %818  ;;  %v165_v5 = vxor.u32 2147483648, %v817_v0 }
  0x85   :  { %v162_v4 = vxor.u32 2147483648, %v819_v2 }
  0x86   :  { %v166_v51 = vsel %vm164_vm3, %v165_v5, %v819_v2  ;;  %638 = vmatpush1.bf16.msra.mxu1 %v803_v30 }
  0x87   :  { %v163_v11 = vsel %vm161_vm2, %v817_v0, %v162_v4  ;;  %639 = vmatprep.subr.bf16.mxu1 %v804_v31 }
  0x88   :  { %v167_v13 = vsel %vm160_vm4, %v163_v11, %v166_v51 }
  0x89   :  { %v168_v17 = vsel %vm157_vm6, nan, %v167_v13  ;;  %v443_v13 = vld [vmem:[%s1172_s4] sm:$0x3] }
  0x8a   :  { %v821_v10 = vpop.eup %820  ;;  %640 = vmatpush1.bf16.msra.mxu1 %v806_v33 }
  0x8b   :  { %v823_v12 = vpop.eup %822  ;;  %v269_v14 = vxor.u32 2147483648, %v821_v10  ;;  %641 = vmatprep.subr.bf16.mxu1 %v807_v34 }
  0x8c   :  { %v266_v15 = vxor.u32 2147483648, %v823_v12 }
  0x8d   :  { %v270_v16 = vsel %vm268_vm5, %v269_v14, %v823_v12  ;;  %v448_v14 = vrot.slane %v443_v13, %v286_v42 }
  0x8e   :  { %v267_v18 = vsel %vm265_vm7, %v821_v10, %v266_v15  ;;  %642 = vmatpush1.bf16.msra.mxu1 %v809_v32  ;;  %v452_v15 = vrot.slane %v443_v13, %v290_v44 }
  0x8f   :  { %v271_v19 = vsel %vm264_vm8, %v267_v18, %v270_v16  ;;  %643 = vmatprep.subr.bf16.mxu1 %v810_v38 }
  0x90   :  { %v272_v37 = vsel %vm261_vm9, nan, %v271_v19 }
  0x91   :  { %v273_v20 = vpack.c.bf16 %v272_v37, %v168_v17 }
  0x92   :  { %644 = vmatpush1.bf16.msra.mxu1 %v812_v39 }
  0x93   :  { %696 = vmatmul.mubr.msk.bf16.vlgmr.msra.gmra.mrb[0].mxu0 %vm334_vm10, %v273_v20  ;;  %645 = vmatprep.subr.bf16.mxu1 %v813_v40 }
  0x96   :  { %646 = vmatpush1.bf16.msra.mxu1 %v815_v26 }
 0x166   :  { %v372_v47 = vpop.f32.mrb[0].mxu0 }
 0x167   :  { %v373_v35 = vadd.f32 %v372_v47, %v287_v45  ;;  %v374_v36 = vpop.f32.mrb[1].mxu0 }
 0x168   :  { %v375_v48 = vadd.f32 %v374_v36, %v291_v46  ;;  %v376_v49 = vpop.f32.mrb[2].mxu0 }
 0x169   :  { %v697_v50 = vmul.f32 -1.442695, %v373_v35  ;;  %v377_v52 = vadd.f32 %v376_v49, %v287_v45  ;;  %v378_v53 = vpop.f32.mrb[3].mxu0 }
 0x16a   :  { %v698_v54 = vmul.f32 -1.442695, %v375_v48  ;;  %v379_v55 = vadd.f32 %v378_v53, %v291_v46 }
 0x16b   :  { %824 = vpow2.f32 %v697_v50  ;;  %v699_v56 = vmul.f32 -1.442695, %v377_v52 }
 0x16c   :  { %826 = vpow2.f32 %v698_v54  ;;  %v700_v9 = vmul.f32 -1.442695, %v379_v55 }
 0x16d   :  { %828 = vpow2.f32 %v699_v56 }
 0x16e   :  { %830 = vpow2.f32 %v700_v9 }
 0x175   :  { %v825_v57 = vpop.eup %824 }
 0x176   :  { %v827_v58 = vpop.eup %826  ;;  %v393_v59 = vadd.f32 1.0, %v825_v57 }
 0x177   :  { %v829_v60 = vpop.eup %828  ;;  %v394_v61 = vadd.f32 1.0, %v827_v58 }
 0x178   :  { %v831_v62 = vpop.eup %830  ;;  %832 = vrcp.f32 %v393_v59  ;;  %v395_v63 = vadd.f32 1.0, %v829_v60 }
 0x179   :  { %834 = vrcp.f32 %v394_v61  ;;  %v396_v0 = vadd.f32 1.0, %v831_v62 }
 0x17a   :  { %836 = vrcp.f32 %v395_v63 }
 0x17b   :  { %838 = vrcp.f32 %v396_v0 }
 0x182   :  { %v833_v1 = vpop.eup %832 }
 0x183   :  { %v835_v2 = vpop.eup %834  ;;  %v405_v5 = vmul.f32 %v833_v1, %v373_v35 }
 0x184   :  { %v837_v3 = vpop.eup %836  ;;  %v406_v11 = vmul.f32 %v835_v2, %v375_v48 }
 0x185   :  { %v839_v4 = vpop.eup %838  ;;  %v407_v6 = vmul.f32 %v837_v3, %v377_v52 }
 0x186   :  { %v408_v51 = vmul.f32 %v839_v4, %v379_v55 }
 0x187   :  { %v409_v10 = vpack.c.bf16 %v407_v6, %v405_v5 }
 0x188   :  { %v410_v12 = vpack.c.bf16 %v408_v51, %v406_v11 }
 0x18a   :  { %647 = vmatprep.mubr.bf16.mxu1 %v410_v12 }
 0x18b   :  { %648 = vmatmul.mubr.bf16.vlgmr.msra.gmra.mrb[0].mxu1 %v409_v10 }
 0x25e   :  { %v649_v16 = vpop.f32.mrb[0].mxu1 }
 0x25f   :  { %v650_v17 = vadd.f32 %v649_v16, %v448_v14  ;;  %v651_v18 = vpop.f32.mrb[1].mxu1 }
 0x260   :  { %v652_v19 = vadd.f32 %v651_v18, %v452_v15  ;;  %v653_v37 = vpop.f32.mrb[2].mxu1 }
 0x261   :  { %658 = vst [vmem:[#allocation8] sm:$0xff] %v650_v17  ;;  %v654_v20 = vadd.f32 %v653_v37, %v448_v14  ;;  %v655_v21 = vpop.f32.mrb[3].mxu1 }
 0x262   :  { %659 = vst [vmem:[#allocation8 + $0x8] sm:$0xff] %v652_v19  ;;  %v656_v22 = vadd.f32 %v655_v21, %v452_v15 }
 0x263   :  { %660 = vst [vmem:[#allocation8 + $0x10] sm:$0xff] %v654_v20 }
 0x264   :  { %661 = vst [vmem:[#allocation8 + $0x18] sm:$0xff] %v656_v22 }
 0x265   :  { %917 = shalt.err (!%p914_p0)
}
 0x266   :  { %s918_s10 = scalar_lea.hbm %s1173_s5, 512 }
 0x267   :  { %p919_p1 = scmp.ne.s32.totalorder %s1173_s5, %s918_s10  ;;  %p922_p2 = scmp.lt.u32.totalorder %s918_s10, %s1173_s5 }
 0x269   :  { %p924_p3 = pnand %p922_p2, %p919_p1 }
 0x26b   :  { %927 = shalt.err (!%p924_p3)
}
 0x26c   :  { %s947_s15 = smov 256   ;;  %s948_s16 = smov 16  }
 0x26d   :  { %673 = dma.vmem_to_hbm [thread:$0]  %s668_s7, 512, %s1173_s5, [#allocation4], %s947_s15, %s947_s15, %s948_s16  }
 0x26e   :  { %932 = dma.done.wait [#allocation4], 512  }
 0x26f   :  { %933 = vsyncadd [#allocation4], 4294966784 }
 0x270   :  { %677 = vsyncpa [#allocation3], 1 }
 0x271   :  { %678 = vsyncpa [#allocation6], 1 }
 0x272   :  { %679 = vsyncpa [#allocation4], 1 }

</bundles_post_ra>
